<compile_context>
chip_gen: v7x
topology: tpu7x:2x2x1
jax: 0.10.0
libtpu: 0.0.40
codegen_flags: <defaults>
</compile_context>

<pallas_src>
import functools
import numpy as np
import jax
import jax.numpy as jnp
from jax.experimental import pallas as pl
from jax.experimental.pallas import tpu as pltpu


def _round_up(x, m):
    return (x + m - 1) // m * m


def _pick_vmem_limit():
    try:
        cap = int(pltpu.get_tpu_info().vmem_capacity_bytes)
    except Exception:
        cap = 64 * 1024 * 1024
    return min(cap * 3 // 4, 96 * 1024 * 1024)


_VMEM_LIMIT = _pick_vmem_limit()
_TM_CAP = 512  # M tile cap for the matmul path (bf16, multiple of 16)


def _pick_tm(m):
    """Pick (tm, padded M). Unit 16 for bf16 packing; keep >=2 blocks when possible."""
    m16 = _round_up(m, 16)
    if m16 >= 2 * _TM_CAP:
        tm = _TM_CAP
    elif m16 >= 32:
        tm = _round_up(m16 // 2, 16)      # ~2 parallel blocks (v7x megacore)
    else:
        tm = m16
    return tm, _round_up(m16, tm)


# ---------------------------------------------------------------------------
# Pallas kernels
# ---------------------------------------------------------------------------
def _mm_bn_kernel(a_ref, b_ref, scale_ref, shift_ref, o_ref, *, relu):
    """Single-K-step matmul (whole weight resident) + fused BN/bias (+ReLU)."""
    acc = jnp.dot(a_ref[...], b_ref[...], preferred_element_type=jnp.float32)
    out = acc * scale_ref[...] + shift_ref[...]
    if relu:
        out = jnp.maximum(out, 0.0)
    o_ref[...] = out.astype(o_ref.dtype)


def _conv_taps_kernel(x_ref, w_ref, scale_ref, shift_ref, o_ref, *, offs, mo, relu):
    """Fused 3x3 stride-1 conv: 9 shifted in-VMEM slices of the flattened padded
    plane, per-tap MXU dots accumulated in f32, BN(+ReLU) epilogue."""
    acc = jnp.dot(x_ref[0, pl.ds(offs[0], mo), :], w_ref[0],
                  preferred_element_type=jnp.float32)
    for t in range(1, len(offs)):
        acc = acc + jnp.dot(x_ref[0, pl.ds(offs[t], mo), :], w_ref[t],
                            preferred_element_type=jnp.float32)
    out = acc * scale_ref[...] + shift_ref[...]
    if relu:
        out = jnp.maximum(out, 0.0)
    o_ref[0] = out.astype(o_ref.dtype)


def _bilinear_kernel(x_ref, mh_ref, mwt_ref, o_ref, *, cc):
    """Separable align_corners=True bilinear upsample of a chunk of channels."""
    mh = mh_ref[...]
    mwt = mwt_ref[...]
    for c in range(cc):
        t = jnp.dot(mh, x_ref[0, c], preferred_element_type=jnp.float32)  # (OH, w)
        o_ref[0, c] = jnp.dot(t.astype(jnp.bfloat16), mwt,
                              preferred_element_type=jnp.float32)


# ---------------------------------------------------------------------------
# Pallas wrappers
# ---------------------------------------------------------------------------
def pallas_matmul_bn(a, b, scale, shift, *, relu, out_dtype=jnp.bfloat16):
    """out = relu?((a @ b) * scale + shift). Weight/K/N resident, grid over M."""
    m, k = a.shape
    kb, n = b.shape
    assert k == kb
    tm, mp = _pick_tm(m)
    a_p = a.astype(jnp.bfloat16)
    if mp != m:
        a_p = jnp.pad(a_p, ((0, mp - m), (0, 0)))
    out = pl.pallas_call(
        functools.partial(_mm_bn_kernel, relu=relu),
        out_shape=jax.ShapeDtypeStruct((mp, n), out_dtype),
        grid=(mp // tm,),
        in_specs=[
            pl.BlockSpec((tm, k), lambda i: (i, 0)),
            pl.BlockSpec((k, n), lambda i: (0, 0)),
            pl.BlockSpec((1, n), lambda i: (0, 0)),
            pl.BlockSpec((1, n), lambda i: (0, 0)),
        ],
        out_specs=pl.BlockSpec((tm, n), lambda i: (i, 0)),
        compiler_params=pltpu.CompilerParams(
            dimension_semantics=("parallel",),
            vmem_limit_bytes=_VMEM_LIMIT),
    )(a_p, b.astype(jnp.bfloat16),
      scale.astype(jnp.float32).reshape(1, n),
      shift.astype(jnp.float32).reshape(1, n))
    return out[:m] if mp != m else out


def _im2col(x_nhwc, kh, kw, stride, padding, dilation):
    # Only used for the 7x7 stem and the two stride-2 3x3 convs.
    # TODO(synk): patch extraction for strided convs is still materialized by XLA
    # feeding the Pallas matmul (bf16); stride-1 3x3 convs use the fused tap kernel.
    b, h, w, cin = x_nhwc.shape
    oh = (h + 2 * padding - dilation * (kh - 1) - 1) // stride + 1
    ow = (w + 2 * padding - dilation * (kw - 1) - 1) // stride + 1
    x_pad = jnp.pad(x_nhwc, ((0, 0), (padding, padding), (padding, padding), (0, 0)))
    slices = []
    for i in range(kh):
        for j in range(kw):
            hs, ws = i * dilation, j * dilation
            sl = x_pad[:, hs:hs + (oh - 1) * stride + 1:stride,
                       ws:ws + (ow - 1) * stride + 1:stride, :]
            slices.append(sl)
    patches = jnp.stack(slices, axis=3)                      # (B, oh, ow, kh*kw, Cin)
    return patches.reshape(b * oh * ow, kh * kw * cin), oh, ow


def conv2d_bn_matmul(x_nhwc, p, *, k, stride, padding, dilation, relu,
                     out_dtype=jnp.bfloat16):
    b, _, _, cin = x_nhwc.shape
    if k == 1:
        xs = x_nhwc[:, ::stride, ::stride, :] if stride > 1 else x_nhwc
        oh, ow = xs.shape[1], xs.shape[2]
        a = xs.reshape(b * oh * ow, cin)
    else:
        a, oh, ow = _im2col(x_nhwc, k, k, stride, padding, dilation)
    cout = p["scale"].shape[0]
    wmat = p["w"].reshape(k * k * cin, cout)
    out = pallas_matmul_bn(a, wmat, p["scale"], p["shift"], relu=relu,
                           out_dtype=out_dtype)
    return out.reshape(b, oh, ow, cout)


def conv3x3_bn_fused(x_nhwc, p, *, dilation, relu):
    """Fused 3x3 stride-1 conv (padding == dilation), BN(+ReLU). No im2col."""
    b, h, w, cin = x_nhwc.shape
    cout = p["scale"].shape[0]
    d = dilation
    wp = w + 2 * d
    mo = h * wp                                    # wide-M (wrap-around cols dropped later)
    l_needed = mo + 2 * d * wp + 2 * d             # max read index + 1
    hp_base = h + 2 * d
    extra = max(0, -(-(l_needed - hp_base * wp) // wp))
    hp2 = hp_base + extra
    lx = hp2 * wp

    # VMEM feasibility guard (double-buffered blocks + f32 accumulators).
    est = 2 * (lx * cin + mo * cout) * 2 + 2 * mo * cout * 4 + 9 * cin * cout * 2
    if est > _VMEM_LIMIT * 6 // 10:
        # TODO(synk): very large planes fall back to im2col + matmul.
        return conv2d_bn_matmul(x_nhwc, p, k=3, stride=1, padding=d, dilation=d,
                                relu=relu)

    x_pad = jnp.pad(x_nhwc.astype(jnp.bfloat16),
                    ((0, 0), (d, d + extra), (d, d), (0, 0)))
    x_flat = x_pad.reshape(b, lx, cin)
    offs = tuple(i * d * wp + j * d for i in range(3) for j in range(3))

    out = pl.pallas_call(
        functools.partial(_conv_taps_kernel, offs=offs, mo=mo, relu=relu),
        out_shape=jax.ShapeDtypeStruct((b, mo, cout), jnp.bfloat16),
        grid=(b,),  # NOTE: one plane per step; B >= 2 keeps both v7x TCs busy.
        in_specs=[
            pl.BlockSpec((1, lx, cin), lambda bb: (bb, 0, 0)),
            pl.BlockSpec((9, cin, cout), lambda bb: (0, 0, 0)),
            pl.BlockSpec((1, cout), lambda bb: (0, 0)),
            pl.BlockSpec((1, cout), lambda bb: (0, 0)),
        ],
        out_specs=pl.BlockSpec((1, mo, cout), lambda bb: (bb, 0, 0)),
        compiler_params=pltpu.CompilerParams(
            dimension_semantics=("parallel",),
            vmem_limit_bytes=_VMEM_LIMIT),
    )(x_flat, p["w"], p["scale"].reshape(1, cout), p["shift"].reshape(1, cout))
    # Drop the wrap-around (pad) columns.
    return out.reshape(b, h, wp, cout)[:, :, :w, :]


def maxpool2d(x_nhwc, ksize=3, stride=2, padding=1):
    # TODO(synk): left to XLA's fused reduce_window (single HBM pass); a Pallas
    # version would need sublane-strided window reads for the stride-2 taps.
    init = jnp.array(-jnp.inf, dtype=x_nhwc.dtype)
    return jax.lax.reduce_window(
        x_nhwc, init, jax.lax.max,
        window_dimensions=(1, ksize, ksize, 1),
        window_strides=(1, stride, stride, 1),
        padding=((0, 0), (padding, padding), (padding, padding), (0, 0)))


def _bilinear_matrix(n_out, n_in):
    """Row-stochastic interpolation matrix, PyTorch bilinear align_corners=True."""
    mat = np.zeros((n_out, n_in), np.float32)
    if n_out == 1 or n_in == 1:
        # TODO(synk): degenerate size-1 edge case approximated by copying column 0.
        mat[:, 0] = 1.0
        return mat
    scl = (n_in - 1) / (n_out - 1)
    for i in range(n_out):
        src = i * scl
        i0 = min(int(np.floor(src)), n_in - 1)
        i1 = min(i0 + 1, n_in - 1)
        w1 = src - i0
        mat[i, i0] += 1.0 - w1
        mat[i, i1] += w1
    return mat


def bilinear_upsample_nchw(x_nchw, out_h, out_w):
    b, c, h, w = x_nchw.shape
    mh = jnp.asarray(_bilinear_matrix(out_h, h), dtype=jnp.bfloat16)       # (OH, h)
    mwt = jnp.asarray(_bilinear_matrix(out_w, w).T, dtype=jnp.bfloat16)    # (w, OW)
    # Channel chunk so the per-step f32 output block stays under ~8 MiB.
    budget = 8 << 20
    max_cc = max(1, budget // max(1, out_h * out_w * 4))
    cc = 1
    for dv in range(1, c + 1):
        if c % dv == 0 and dv <= max_cc:
            cc = dv
    out = pl.pallas_call(
        functools.partial(_bilinear_kernel, cc=cc),
        out_shape=jax.ShapeDtypeStruct((b, c, out_h, out_w), jnp.float32),
        grid=(b, c // cc),
        in_specs=[
            pl.BlockSpec((1, cc, h, w), lambda bb, cj: (bb, cj, 0, 0)),
            pl.BlockSpec((out_h, h), lambda bb, cj: (0, 0)),
            pl.BlockSpec((w, out_w), lambda bb, cj: (0, 0)),
        ],
        out_specs=pl.BlockSpec((1, cc, out_h, out_w), lambda bb, cj: (bb, cj, 0, 0)),
        compiler_params=pltpu.CompilerParams(
            dimension_semantics=("parallel", "parallel"),
            vmem_limit_bytes=_VMEM_LIMIT),
    )(x_nchw.astype(jnp.bfloat16), mh, mwt)
    return out


# ---------------------------------------------------------------------------
# ResNet-18 (output_stride=16) definition
# ---------------------------------------------------------------------------
def _conv_bn_params(key, cin, cout, k):
    k1, k2, k3, k4, k5 = jax.random.split(key, 5)
    w = jax.random.normal(k1, (cout, cin, k, k), jnp.float32) * np.sqrt(2.0 / (cin * k * k))
    gamma = 1.0 + 0.05 * jax.random.normal(k2, (cout,), jnp.float32)
    beta = 0.05 * jax.random.normal(k3, (cout,), jnp.float32)
    mean = 0.05 * jax.random.normal(k4, (cout,), jnp.float32)
    var = 1.0 + 0.05 * jnp.abs(jax.random.normal(k5, (cout,), jnp.float32))
    # Inference-mode BatchNorm folded to per-channel scale/shift (eps=1e-5).
    scale = gamma / jnp.sqrt(var + 1e-5)
    shift = beta - mean * scale
    # Weight stored as (kh*kw, Cin, Cout) bf16 (taps-major) — used both by the
    # fused tap kernel and (reshaped to (K, Cout)) by the matmul path.
    w_taps = jnp.transpose(w, (2, 3, 1, 0)).reshape(k * k, cin, cout)
    return {"w": w_taps.astype(jnp.bfloat16),
            "scale": scale.astype(jnp.float32),
            "shift": shift.astype(jnp.float32)}


def init_resnet18_16s(key, num_classes=16):
    keys = iter(jax.random.split(key, 32))
    params = {"conv1": _conv_bn_params(next(keys), 3, 64, 7)}
    # (planes, blocks, stride, dilation) — output_stride=16 => layer4 is stride 1
    # with dilation 2 (fully-conv torchvision resnet fork).
    layer_cfg = [(64, 2, 1, 1), (128, 2, 2, 1), (256, 2, 2, 1), (512, 2, 1, 2)]
    inplanes = 64
    layers, cfgs = [], []
    for planes, blocks, stride, dilation in layer_cfg:
        bps, bcs = [], []
        for bidx in range(blocks):
            s = stride if bidx == 0 else 1
            bp = {"conv1": _conv_bn_params(next(keys), inplanes, planes, 3),
                  "conv2": _conv_bn_params(next(keys), planes, planes, 3)}
            has_down = bidx == 0 and (s != 1 or inplanes != planes)
            if has_down:
                bp["down"] = _conv_bn_params(next(keys), inplanes, planes, 1)
            bps.append(bp)
            bcs.append({"stride": s, "dilation": dilation, "down": has_down})
            inplanes = planes
        layers.append(bps)
        cfgs.append(bcs)
    params["layers"] = layers
    # fc = nn.Conv2d(512, num_classes, 1), weight ~ N(0, 0.01), bias = 0.
    wfc = 0.01 * jax.random.normal(next(keys), (num_classes, 512, 1, 1), jnp.float32)
    params["fc"] = {
        "w": jnp.transpose(wfc, (2, 3, 1, 0)).reshape(1, 512, num_classes).astype(jnp.bfloat16),
        "scale": jnp.ones((num_classes,), jnp.float32),
        "shift": jnp.zeros((num_classes,), jnp.float32),
    }
    return params, cfgs


def basic_block(x, p, cfg):
    s, d = cfg["stride"], cfg["dilation"]
    if s == 1:
        out = conv3x3_bn_fused(x, p["conv1"], dilation=d, relu=True)
    else:
        out = conv2d_bn_matmul(x, p["conv1"], k=3, stride=s, padding=d, dilation=d,
                               relu=True)
    if cfg["down"]:
        identity = conv2d_bn_matmul(x, p["down"], k=1, stride=s, padding=0,
                                    dilation=1, relu=False)
    else:
        identity = x
    out = conv3x3_bn_fused(out, p["conv2"], dilation=d, relu=False)
    # Residual add + ReLU as a single fused XLA elementwise pass.
    return jnp.maximum(out + identity, 0.0)


def resnet18_16s_forward(params, cfgs, x_nchw, upscale=True):
    in_h, in_w = x_nchw.shape[2], x_nchw.shape[3]
    x = jnp.transpose(x_nchw, (0, 2, 3, 1)).astype(jnp.bfloat16)          # NCHW -> NHWC
    x = conv2d_bn_matmul(x, params["conv1"], k=7, stride=2, padding=3, dilation=1,
                         relu=True)
    x = maxpool2d(x, 3, 2, 1)
    for layer_p, layer_c in zip(params["layers"], cfgs):
        for bp, bc in zip(layer_p, layer_c):
            x = basic_block(x, bp, bc)
    x = conv2d_bn_matmul(x, params["fc"], k=1, stride=1, padding=0, dilation=1,
                         relu=False, out_dtype=jnp.float32)
    x = jnp.transpose(x, (0, 3, 1, 2))                                    # NHWC -> NCHW
    if upscale:
        x = bilinear_upsample_nchw(x, in_h, in_w)
    return x


def make_forward(cfgs, upscale=True):
    @jax.jit
    def fwd(params, x):
        return resnet18_16s_forward(params, cfgs, x, upscale=upscale)
    return fwd


if __name__ == "__main__":
    root = jax.random.PRNGKey(0)
    pkey, xkey, mkey, ckey = jax.random.split(root, 4)

    # Self-check 1: resident-weight matmul+BN kernel vs reference.
    ka, kb = jax.random.split(mkey)
    a = jax.random.normal(ka, (48, 300), jnp.float32)
    bmat = jax.random.normal(kb, (300, 96), jnp.float32)
    got = pallas_matmul_bn(a, bmat, jnp.ones((96,), jnp.float32),
                           jnp.zeros((96,), jnp.float32),
                           relu=False, out_dtype=jnp.float32)
    want = jnp.dot(a.astype(jnp.bfloat16).astype(jnp.float32),
                   bmat.astype(jnp.bfloat16).astype(jnp.float32))
    assert bool(jnp.allclose(got, want, rtol=2e-2, atol=2e-2)), "matmul mismatch"

    # Self-check 2: fused 3x3 tap-conv kernel vs lax.conv_general_dilated.
    for dil in (1, 2):
        kx, kp = jax.random.split(jax.random.fold_in(ckey, dil))
        cp = _conv_bn_params(kp, 32, 48, 3)
        xc = jax.random.normal(kx, (2, 6, 10, 32), jnp.float32).astype(jnp.bfloat16)
        got = conv3x3_bn_fused(xc, cp, dilation=dil, relu=True).astype(jnp.float32)
        wref = cp["w"].astype(jnp.float32).reshape(3, 3, 32, 48)
        ref = jax.lax.conv_general_dilated(
            xc.astype(jnp.float32), wref, window_strides=(1, 1),
            padding=((dil, dil), (dil, dil)), rhs_dilation=(dil, dil),
            dimension_numbers=("NHWC", "HWIO", "NHWC"))
        ref = jnp.maximum(ref * cp["scale"] + cp["shift"], 0.0)
        assert bool(jnp.allclose(got, ref, rtol=3e-2, atol=3e-2)), \
            f"fused conv mismatch (dilation={dil})"

    num_classes = 16
    params, cfgs = init_resnet18_16s(pkey, num_classes=num_classes)
    x = jax.random.normal(xkey, (2, 3, 32, 32), dtype=jnp.float32)
    fwd = make_forward(cfgs, upscale=True)
    out = jax.block_until_ready(fwd(params, x))
    assert out.shape == (2, num_classes, 32, 32), out.shape
    assert bool(jnp.all(jnp.isfinite(out)))
    print("KERNEL_OK")
</pallas_src>

<mosaic_0001>
module attributes {stable_mosaic.version = 11 : i64} {
  func.func @_mm_bn_kernel(%arg0: i32, %arg1: memref<32x300xbf16, #tpu.memory_space<vmem>>, %arg2: memref<300x96xbf16, #tpu.memory_space<vmem>>, %arg3: memref<1x96xf32, #tpu.memory_space<vmem>>, %arg4: memref<1x96xf32, #tpu.memory_space<vmem>>, %arg5: memref<32x96xf32, #tpu.memory_space<vmem>>) attributes {dimension_semantics = [#tpu.dimension_semantics<parallel>], iteration_bounds = array<i64: 2>, scalar_prefetch = 0 : i64, scratch_operands = 0 : i64, tpu.core_type = #tpu.core_type<tc>, window_params = [{transform_indices = @transform_0, window_bounds = array<i64: 32, 300>}, {pipeline_mode = #tpu.pipeline_mode<synchronous>, transform_indices = @transform_1, window_bounds = array<i64: 300, 96>}, {pipeline_mode = #tpu.pipeline_mode<synchronous>, transform_indices = @transform_2, window_bounds = array<i64: 1, 96>}, {pipeline_mode = #tpu.pipeline_mode<synchronous>, transform_indices = @transform_3, window_bounds = array<i64: 1, 96>}, {transform_indices = @transform_4, window_bounds = array<i64: 32, 96>}]} {
    %c0 = arith.constant 0 : index
    %c0_0 = arith.constant 0 : index
    %0 = vector.load %arg1[%c0, %c0_0] : memref<32x300xbf16, #tpu.memory_space<vmem>>, vector<32x300xbf16>
    %c0_1 = arith.constant 0 : index
    %c0_2 = arith.constant 0 : index
    %1 = vector.load %arg2[%c0_1, %c0_2] : memref<300x96xbf16, #tpu.memory_space<vmem>>, vector<300x96xbf16>
    %cst = arith.constant dense<0.000000e+00> : vector<32x96xf32>
    %2 = tpu.matmul %0, %1, %cst {dimension_numbers = #tpu.dot_dimension_numbers<[1], [0], [0], [1], [0, 0, 1, 1], [], []>} : vector<32x300xbf16>, vector<300x96xbf16>, vector<32x96xf32> -> vector<32x96xf32>
    %c0_3 = arith.constant 0 : index
    %c0_4 = arith.constant 0 : index
    %3 = vector.load %arg3[%c0_3, %c0_4] : memref<1x96xf32, #tpu.memory_space<vmem>>, vector<1x96xf32>
    %4 = vector.broadcast %3 : vector<1x96xf32> to vector<32x96xf32>
    %5 = arith.mulf %2, %4 : vector<32x96xf32>
    %c0_5 = arith.constant 0 : index
    %c0_6 = arith.constant 0 : index
    %6 = vector.load %arg4[%c0_5, %c0_6] : memref<1x96xf32, #tpu.memory_space<vmem>>, vector<1x96xf32>
    %7 = vector.broadcast %6 : vector<1x96xf32> to vector<32x96xf32>
    %8 = arith.addf %5, %7 : vector<32x96xf32>
    %c0_7 = arith.constant 0 : index
    %c0_8 = arith.constant 0 : index
    %9 = vector.load %arg5[%c0_7, %c0_8] : memref<32x96xf32, #tpu.memory_space<vmem>>, vector<32x96xf32>
    tpu.vector_store %arg5[%c0_7, %c0_8], %8 {strides = array<i32>} : memref<32x96xf32, #tpu.memory_space<vmem>>, vector<32x96xf32>,
    return
  }
  func.func @transform_0(%arg0: i32) -> (i32, i32) {
    %c0_i32 = arith.constant 0 : i32
    %c0_i32_0 = arith.constant 0 : i32
    return %arg0, %c0_i32 : i32, i32
  }
  func.func @transform_1(%arg0: i32) -> (i32, i32) {
    %c0_i32 = arith.constant 0 : i32
    %c0_i32_0 = arith.constant 0 : i32
    %c0_i32_1 = arith.constant 0 : i32
    return %c0_i32, %c0_i32_0 : i32, i32
  }
  func.func @transform_2(%arg0: i32) -> (i32, i32) {
    %c0_i32 = arith.constant 0 : i32
    %c0_i32_0 = arith.constant 0 : i32
    %c0_i32_1 = arith.constant 0 : i32
    return %c0_i32, %c0_i32_0 : i32, i32
  }
  func.func @transform_3(%arg0: i32) -> (i32, i32) {
    %c0_i32 = arith.constant 0 : i32
    %c0_i32_0 = arith.constant 0 : i32
    %c0_i32_1 = arith.constant 0 : i32
    return %c0_i32, %c0_i32_0 : i32, i32
  }
  func.func @transform_4(%arg0: i32) -> (i32, i32) {
    %c0_i32 = arith.constant 0 : i32
    %c0_i32_0 = arith.constant 0 : i32
    return %arg0, %c0_i32 : i32, i32
  }
}

</mosaic_0001>

<bundles_post_ra>
// kernel: tpu_custom_call.1
= control target key start
LH: loop header
LB: loop body
LE: loop exit
PB: predicated region body
PF: predicated region fallthrough
CT: control target
= control target key end

     0   :  { %9 = vsyncpa [#allocation3], 0  ;;  %s1024_s0 = inlined_call_operand.vmem [shape: bf16[64,300], index: 0, kind: input, shape index: {}]   ;;  %s1025_s1 = inlined_call_operand.vmem [shape: bf16[300,96], index: 1, kind: input, shape index: {}]   ;;  %s1026_s2 = inlined_call_operand.vmem [shape: f32[1,96], index: 2, kind: input, shape index: {}]   ;;  %s1027_s3 = inlined_call_operand.vmem [shape: f32[1,96], index: 3, kind: input, shape index: {}]   ;;  %s1028_s4 = inlined_call_operand.hbm [shape: f32[64,96], index: 4, kind: output, shape index: {}]  }
   0x1   :  { %11 = vsyncpa [#allocation3 + $0x1], 0  ;;  %s851_s15 = smov 0   ;;  %s853_s16 = smov 0  }
   0x2   :  { %s855_s17 = smov 0   ;;  %s857_s18 = smov 0  }
   0x3 LB: > { %s872_s19 = sadd.s32 4294967295, %s821_s18   ;;  %s604_s20 = sadd.s32 4294967294, %s821_s18   ;;  %s821_s18 = sphi %s857_s18, %s1034_s18   ;;  %s817_s17 = sphi %s855_s17, %s1033_s17   ;;  %s813_s16 = sphi %s853_s16, %s1032_s16   ;;  %s809_s15 = sphi %s851_s15, %s1031_s15  }
   0x4   : > { %s876_s21 = sadd.s32 1, %s821_s18   ;;  %s113_s22 = sadd.s32 1, %s817_s17 }
   0x5   : > { %s110_s23 = ssub.s32 %s821_s18, %s876_s21  ;;  %p123_p0 = scmp.ne.s32.totalorder %s817_s17, %s813_s16 }
   0x6   : > { %p111_p1 = scmp.eq.s32.totalorder %s110_s23, 0  ;;  %p124_p2 = scmp.eq.s32.totalorder %s872_s19, 1 }
   0x7   : > { %p129_p3 = scmp.ne.s32.totalorder %s813_s16, %s809_s15  ;;  %p130_p4 = scmp.eq.s32.totalorder %s604_s20, 1 }
   0x8   : > { %s887_s24 = scalar_select %p111_p1, %s817_s17, %s113_s22  }
   0x9   : > { %p889_p5 = por %p124_p2, %p123_p0  ;;  %p893_p6 = por %p130_p4, %p129_p3 }
   0xa   : > { %p607_p7 = scmp.ge.s32.totalorder %s821_s18, 1  ;;  %p167_p8 = scmp.lt.s32.totalorder %s821_s18, 3 }
   0xc   : > { %p168_p9 = pnand %p607_p7, %p167_p8 }
   0xd   : > { %v732_v0 = vld [vmem:[%s1025_s1 + $0x40] sm:$0xff] (!%p168_p9)   ;;  %v734_v2 = vld [vmem:[%s1025_s1 + $0x48] sm:$0xff] (!%p168_p9)   ;;  %s609_s7 = sshll.u32 (!%p168_p9), %s872_s19, 2  ;;  %v736_v4 = vld [vmem:[%s1025_s1 + $0x50] sm:$0xff] (!%p168_p9)   ;;  %vm399_vm0 = vcmask (!%p168_p9), 1045504   ;;  %vm392_vm1 = vcmask (!%p168_p9), 359424  }
   0xe   : > { %171 = sbr.rel (%p168_p9) target bundleno = 292 (0x124), region = 36  ;;  %v733_v1 = vld [vmem:[%s1025_s1] sm:$0xff] (!%p168_p9)   ;;  %646 = vmatprep.subr.bf16.mxu0 (!%p168_p9), %v732_v0  ;;  %v735_v3 = vld [vmem:[%s1025_s1 + $0x8] sm:$0xff] (!%p168_p9)   ;;  %p195_p10 = scmp.lt.s32.totalorder (!%p168_p9), %s609_s7, 7  ;;  %v737_v5 = vld [vmem:[%s1025_s1 + $0x10] sm:$0xff] (!%p168_p9)   ;;  %vm523_vm2 = vcmask (!%p168_p9), 785408  }
   0xf   : > { %647 = vmatpush3.bf16.msra.mxu0 (!%p168_p9), %v733_v1  ;;  %v738_v6 = vld [vmem:[%s1025_s1 + $0x58] sm:$0xff] (!%p168_p9)   ;;  %v740_v8 = vld [vmem:[%s1025_s1 + $0x60] sm:$0xff] (!%p168_p9)   ;;  %v747_v11 = vld [vmem:[%s1025_s1 + $0x88] sm:$0xff] (!%p168_p9)   ;;  %s191_s11 = sand.u32 (!%p168_p9), 1, %s813_s16   ;;  %s645_s23 = sshll.u32 (!%p168_p9), %s872_s19, 9 }
  0x10   : > { %648 = vmatprep.subr.bf16.mxu0 (!%p168_p9), %v734_v2  ;;  %v739_v7 = vld [vmem:[%s1025_s1 + $0x18] sm:$0xff] (!%p168_p9)   ;;  %v744_v9 = vld [vmem:[%s1025_s1 + $0x80] sm:$0xff] (!%p168_p9)   ;;  %v742_v12 = vld [vmem:[%s1025_s1 + $0x68] sm:$0xff] (!%p168_p9)   ;;  %s608_s14 = sshll.u32 (!%p168_p9), %s191_s11, 5  ;;  %s975_s30 = scalar_lea.hbm (!%p168_p9), %s1028_s4, %s645_s23 }
  0x11   : > { %v741_v10 = vld [vmem:[%s1025_s1 + $0x20] sm:$0xff] (!%p168_p9)   ;;  %679 = vmatprep.subr.bf16.mxu1 (!%p168_p9), %v744_v9  ;;  %v743_v13 = vld [vmem:[%s1025_s1 + $0x28] sm:$0xff] (!%p168_p9)   ;;  %v750_v14 = vld [vmem:[%s1025_s1 + $0x90] sm:$0x3f] (!%p168_p9)   ;;  %s983_s19 = scalar_lea.sflag (!%p168_p9), [#allocation3], %s191_s11  ;;  %s823_s6 = smov (!%p168_p9), [#allocation2]  }
  0x12   : > { %680 = vmatpush3.bf16.msra.mxu1 (!%p168_p9), %v744_v9  ;;  %v745_v15 = vld [vmem:[%s1025_s1 + $0x70] sm:$0xff] (!%p168_p9)   ;;  %v401_v17 = vsel (!%p168_p9), %vm399_vm0, %v750_v14, 0  ;;  %v748_v21 = vld [vmem:[%s1025_s1 + $0x78] sm:$0xff] (!%p168_p9)   ;;  %v638_v35 = vld [vmem:[%s1026_s2] ss:$0 sm:$0xff] (!%p168_p9)  ;;  %s763_s8 = sshll.u32 (!%p168_p9), %s823_s6, 4  ;;  %s764_s8 = int_to_ptr.vmem [resolvable:$false] %s763_s8 }
  0x13   : > { %649 = vmatpush3.bf16.msra.mxu0 (!%p168_p9), %v735_v3  ;;  %681 = vmatprep.subr.bf16.mxu1 (!%p168_p9), %v747_v11  ;;  %v746_v20 = vld [vmem:[%s1025_s1 + $0x30] sm:$0xff] (!%p168_p9)   ;;  %v749_v22 = vld [vmem:[%s1025_s1 + $0x38] sm:$0xff] (!%p168_p9)   ;;  %v639_v38 = vld [vmem:[%s1027_s3] ss:$0 sm:$0xff] (!%p168_p9)  ;;  %s765_s9 = scalar_lea.vmem (!%p168_p9), %s764_s8, 1024 }
  0x14   : > { %650 = vmatprep.subr.bf16.mxu0 (!%p168_p9), %v736_v4 }
  0x15   : > { %s1036_s7 = smov (!%p195_p10, %s609_s7), 7 }
  0x16   : > { %s690_s5 = smul.u32 12, %s1036_s7  ;;  %682 = vmatpush3.bf16.msra.mxu1 %v747_v11 }
  0x17   : > { %651 = vmatpush3.bf16.msra.mxu0 %v737_v5  ;;  %689 = vmatprep.subr.msk.bf16.mxu1 %vm399_vm0, %v750_v14 }
  0x18   : > { %652 = vmatprep.subr.bf16.mxu0 %v738_v6  ;;  %s199_s22 = scalar_lea.vmem %s1024_s0, %s690_s5 }
  0x19   : > { %v753_v16 = vld [vmem:[%s199_s22 + $0x4] ss:$12 sps:$4 sm:$0xff]   ;;  %v754_v18 = vld [vmem:[%s199_s22 + $0x8] ss:$12 sps:$4 sm:$0xff]   ;;  %v755_v19 = vld [vmem:[%s199_s22 + $0x20] ss:$12 sps:$4 sm:$0xff]  }
  0x1a   : > { %435 = vmatprep.mubr.bf16.mxu0 %v753_v16  ;;  %684 = vmatpush3.bf16.msra.mxu1 %v401_v17  ;;  %v751_v23 = vld [vmem:[%s199_s22] ss:$12 sps:$4 sm:$0xff]   ;;  %v756_v24 = vld [vmem:[%s199_s22 + $0x1c] ss:$12 sps:$4 sm:$0xff]   ;;  %v758_v25 = vld [vmem:[%s199_s22 + $0x18] ss:$12 sps:$4 sm:$0xff]  }
  0x1b   : > { %653 = vmatpush3.bf16.msra.mxu0 %v739_v7  ;;  %685 = vmatprep.mubr.msk.bf16.mxu1 %vm392_vm1, %v754_v18  ;;  %s193_s22 = scalar_lea.vmem [#allocation2], %s608_s14 }
  0x1c   : > { %654 = vmatprep.subr.bf16.mxu0 %v740_v8  ;;  %s542_s27 = sshll.u32 %s193_s22, 4  ;;  %s977_s27 = int_to_ptr.vmem [resolvable:$true] %s542_s27 }
  0x1d   : > { %686 = vmatmul.mubr.msk.bf16.vlgmr.msra.gmra.mrb[0].mxu1 %vm392_vm1, %v755_v19  ;;  %s759_s5 = scalar_lea.vmem %s977_s27, 512  ;;  %p766_p0 = scmp.lt.s32.totalorder %s977_s27, %s764_s8 }
  0x1e   : > { %p760_p11 = scmp.ne.s32.totalorder %s977_s27, %s759_s5  ;;  %p767_p1 = scmp.lt.s32.totalorder %s765_s9, %s759_s5 }
  0x1f   : > { %655 = vmatpush3.bf16.msra.mxu0 %v741_v10 }
  0x20   : > { %656 = vmatprep.subr.bf16.mxu0 %v742_v12  ;;  %p761_p12 = pnand %p760_p11, %p889_p5  ;;  %p768_p2 = por %p767_p1, %p766_p0 }
  0x22   : > { %p762_p13 = pneg %p761_p12 }
  0x23   : > { %657 = vmatpush3.bf16.msra.mxu0 %v743_v13 }
  0x24   : > { %658 = vmatprep.subr.bf16.mxu0 %v745_v15  ;;  %p769_p3 = pnand %p768_p2, %p762_p13 }
  0x27   : > { %659 = vmatpush3.bf16.msra.mxu0 %v746_v20 }
  0x28   : > { %660 = vmatprep.subr.bf16.mxu0 %v748_v21 }
  0x2b   : > { %661 = vmatpush3.bf16.msra.mxu0 %v749_v22 }
  0x2e   : > { %436 = vmatmul.mubr.bf16.vlgmr.msra.gmra.mrb[0].mxu0 %v751_v23 }
  0x2f   : > { %443 = vmatprep.mubr.bf16.mxu0 %v756_v24 }
  0x36   : > { %444 = vmatmul.mubr.bf16.gmra.mrb[4].mxu0 %v758_v25 }
  0xf0   : > { %v687_v26 = vpop.f32.mrb[0].mxu1 }
  0xf1   : > { %v486_v27 = vpop.f32.mrb[1].mxu1 }
  0xf2   : > { %v688_v28 = vpop.f32.mrb[2].mxu1 }
  0xf3   : > { %v489_v29 = vpop.f32.mrb[3].mxu1 }
 0x101   : > { %v662_v30 = vpop.f32.mrb[0].mxu0 }
 0x102   : > { %v663_v31 = vpop.f32.mrb[1].mxu0 }
 0x103   : > { %v664_v32 = vadd.f32 %v663_v31, %v662_v30  ;;  %v665_v33 = vpop.f32.mrb[2].mxu0 }
 0x104   : > { %v666_v34 = vpop.f32.mrb[3].mxu0 }
 0x105   : > { %v667_v36 = vadd.f32 %v666_v34, %v665_v33  ;;  %v487_v37 = vadd.f32 %v664_v32, %v486_v27 }
 0x107   : > { %v508_v39 = vmul.f32 %v638_v35, %v487_v37  ;;  %v490_v40 = vadd.f32 %v667_v36, %v489_v29 }
 0x109   : > { %v519_v41 = vadd.f32 %v639_v38, %v508_v39  ;;  %v509_v42 = vmul.f32 %v638_v35, %v490_v40  ;;  %v668_v43 = vpop.f32.mrb[4].mxu0 }
 0x10a   : > { %v669_v44 = vpop.f32.mrb[5].mxu0 }
 0x10b   : > { %524 = vst.msk [vmem:[%s193_s22] sm:$0xff] %vm523_vm2, %v519_v41  ;;  %v520_v45 = vadd.f32 %v639_v38, %v509_v42  ;;  %v670_v46 = vadd.f32 %v669_v44, %v668_v43  ;;  %v671_v47 = vpop.f32.mrb[6].mxu0 }
 0x10c   : > { %v672_v48 = vpop.f32.mrb[7].mxu0 }
 0x10d   : > { %525 = vst.msk [vmem:[%s193_s22 + $0x8] sm:$0xff] %vm523_vm2, %v520_v45  ;;  %v495_v49 = vadd.f32 %v687_v26, %v670_v46  ;;  %v673_v50 = vadd.f32 %v672_v48, %v671_v47 }
 0x10f   : > { %v510_v51 = vmul.f32 %v638_v35, %v495_v49  ;;  %v498_v52 = vadd.f32 %v688_v28, %v673_v50 }
 0x111   : > { %v521_v53 = vadd.f32 %v639_v38, %v510_v51  ;;  %v511_v54 = vmul.f32 %v638_v35, %v498_v52 }
 0x113   : > { %526 = vst.msk [vmem:[%s193_s22 + $0x10] sm:$0xff] %vm523_vm2, %v521_v53  ;;  %v522_v55 = vadd.f32 %v639_v38, %v511_v54 }
 0x115   : > { %527 = vst.msk [vmem:[%s193_s22 + $0x18] sm:$0xff] %vm523_vm2, %v522_v55 }
 0x116   : > { %772 = shalt.err (!%p769_p3)
}
 0x117   : > { %s773_s10 = scalar_lea.hbm %s975_s30, 512  ;;  %s777_s13 = scalar_lea.hbm %s1028_s4, 1024 }
 0x118   : > { %p774_p4 = scmp.ne.s32.totalorder %s975_s30, %s773_s10  ;;  %p778_p9 = scmp.lt.u32.totalorder %s975_s30, %s1028_s4 }
 0x119   : > { %p779_p10 = scmp.lt.u32.totalorder %s777_s13, %s773_s10  ;;  %p781_p12 = scmp.lt.u32.totalorder %s773_s10, %s975_s30 }
 0x11a   : > { %p775_p7 = pnand %p774_p4, %p889_p5 }
 0x11b   : > { %p780_p11 = por %p779_p10, %p778_p9 }
 0x11c   : > { %p776_p8 = pneg %p775_p7 }
 0x11d   : > { %p782_p13 = por %p781_p12, %p780_p11 }
 0x11f   : > { %p783_p0 = pnand %p782_p13, %p776_p8 }
 0x121   : > { %786 = shalt.err (!%p783_p0)
}
 0x122   : > { %s824_s20 = smov 128   ;;  %s825_s22 = smov 8  }
 0x123   : > { %691 = dma.vmem_to_hbm [thread:$0]  (%p889_p5), %s977_s27, 512, %s975_s30, %s983_s19, %s824_s20, %s824_s20, %s825_s22  }
 0x124 PF: > { %p697_p1 = scmp.ge.s32.totalorder %s821_s18, 2  ;;  %s557_s23 = sand.u32 1, %s809_s15  }
 0x125   : > { %s558_s28 = scalar_lea.sflag [#allocation3], %s557_s23 }
 0x126   : > { %p694_p2 = pnand %p697_p1, %p893_p6 }
 0x128   : > { %804 = dma.done.wait (!%p694_p2), %s558_s28, 512  }
 0x129   : > { %806 = vsyncadd (!%p694_p2), %s558_s28, 4294966784  ;;  %p14_p3 = scmp.ge.s32.totalorder %s876_s21, 4   ;;  %s1031_s15 = smov %s813_s16 }
 0x12a   : > { %s1032_s16 = smov %s817_s17  ;;  %s1033_s17 = smov %s887_s24 }
 0x12b   : > { %s1034_s18 = smov %s876_s21  ;;  %16 = sbr.rel (!%p14_p3) target bundleno = 3 (0x3), region = 71 }
 0x132   :  { %563 = vsyncpa [#allocation3], 1 }
 0x133   :  { %565 = vsyncpa [#allocation3 + $0x1], 1 }

</bundles_post_ra>
